<compile_context>
chip_gen: v7x
topology: tpu7x:2x2x1
jax: 0.10.0
libtpu: 0.0.40
codegen_flags: <defaults>
</compile_context>

<pallas_src>
import jax
import jax.numpy as jnp
from jax.experimental import pallas as pl
from jax.experimental.pallas import tpu as pltpu

_SUBLANE_F32 = 8      # f32 sublane multiple for batch tiles
_SMALL_BATCH = 512    # below this, run a single grid step (tm = B)


def _round_up(x, m):
    return ((x + m - 1) // m) * m


def _linear_kernel(x_ref, w_ref, b_ref, o_ref):
    # MXU matmul with f32 accumulation; bias add (VPU) as the epilogue.
    acc = jnp.dot(x_ref[...], w_ref[...], preferred_element_type=jnp.float32)
    o_ref[...] = (acc + b_ref[...]).astype(o_ref.dtype)


def torques_forward(x, w_t, b, *, tile_m=1024):
    """y = x @ w_t + b  (equivalent to nn.Linear with weight = w_t.T, bias = b).

    x   : (B, H)          float32
    w_t : (H, A)          float32   (transpose of PyTorch's (A, H) weight)
    b   : (A,) or (1, A)  float32
    out : (B, A)          float32
    """
    B, H = x.shape
    A = w_t.shape[1]
    if b.ndim == 1:
        b = b.reshape(1, A)

    if B <= _SMALL_BATCH:
        # Fast path: one grid step, block shapes equal full array dims (legal
        # for any B), no padding, no output slice.
        tm = B
        B_pad = B
    else:
        # Large-batch path: big tiles (multiple of 8 sublanes), but keep the
        # grid at >= 2 tiles so v7x's two TensorCores both get work.
        tm = min(_round_up(tile_m, _SUBLANE_F32),
                 _round_up(pl.cdiv(B, 2), _SUBLANE_F32))
        # Pad only to a multiple of 8 (not of tm); the partial last block is
        # handled by the pipeline and any rows >= B are stripped below.
        B_pad = _round_up(B, _SUBLANE_F32)
        if B_pad != B:
            x = jnp.pad(x, ((0, B_pad - B), (0, 0)))

    grid = (pl.cdiv(B_pad, tm),)

    cost = pl.CostEstimate(
        flops=2 * B_pad * H * A,
        transcendentals=0,
        bytes_accessed=4 * (B_pad * H + H * A + A + B_pad * A),
    )

    out = pl.pallas_call(
        _linear_kernel,
        out_shape=jax.ShapeDtypeStruct((B_pad, A), x.dtype),
        grid_spec=pl.GridSpec(
            grid=grid,
            in_specs=[
                # x: one batch tile per grid step.
                pl.BlockSpec((tm, H), lambda i: (i, 0)),
                # weight: constant block index -> loaded once, VMEM-resident.
                pl.BlockSpec((H, A), lambda i: (0, 0)),
                # bias: constant block index -> loaded once, VMEM-resident.
                pl.BlockSpec((1, A), lambda i: (0, 0)),
            ],
            out_specs=pl.BlockSpec((tm, A), lambda i: (i, 0)),
        ),
        compiler_params=pltpu.CompilerParams(
            # Batch tiles are independent -> megacore-shardable on v7x.
            dimension_semantics=("parallel",),
        ),
        cost_estimate=cost,
    )(x, w_t, b)

    # NOTE: when B was padded to a sublane multiple, rows >= B of the raw
    # kernel output are padding-derived and must never be consumed.
    return out if B_pad == B else out[:B]


if __name__ == "__main__":
    # Small shapes implied by the module: hidden_dim=32, n_actuators=8, batch=2.
    batch, hidden_dim, n_actuators = 2, 32, 8

    key = jax.random.PRNGKey(0)
    kx, kw, kb = jax.random.split(key, 3)

    # Deterministic parameter init mimicking nn.Linear's U(-1/sqrt(in), 1/sqrt(in)).
    bound = 1.0 / jnp.sqrt(jnp.float32(hidden_dim))
    # PyTorch weight is (n_actuators, hidden_dim); the kernel uses its transpose.
    w = jax.random.uniform(kw, (n_actuators, hidden_dim), jnp.float32, -bound, bound)
    b = jax.random.uniform(kb, (n_actuators,), jnp.float32, -bound, bound)
    w_t = w.T                          # (hidden_dim, n_actuators)
    b2d = b.reshape(1, n_actuators)

    x = jax.random.normal(kx, (batch, hidden_dim), jnp.float32)

    y = torques_forward(x, w_t, b2d)
    jax.block_until_ready(y)

    y_ref = x @ w_t + b2d
    assert y.shape == (batch, n_actuators)
    assert jnp.allclose(y, y_ref, atol=1e-5, rtol=1e-5)

    # Medium batch: still the single-step fast path.
    x300 = jax.random.normal(jax.random.PRNGKey(1), (300, hidden_dim), jnp.float32)
    y300 = torques_forward(x300, w_t, b2d)
    jax.block_until_ready(y300)
    assert y300.shape == (300, n_actuators)
    assert jnp.allclose(y300, x300 @ w_t + b2d, atol=1e-5, rtol=1e-5)

    # Large batch: tiled path, exact multiple of the tile (grid of 2).
    x2048 = jax.random.normal(jax.random.PRNGKey(2), (2048, hidden_dim), jnp.float32)
    y2048 = torques_forward(x2048, w_t, b2d)
    jax.block_until_ready(y2048)
    assert y2048.shape == (2048, n_actuators)
    assert jnp.allclose(y2048, x2048 @ w_t + b2d, atol=1e-5, rtol=1e-5)

    # Large, ragged batch: sublane pad + partial last block + output slice.
    x2051 = jax.random.normal(jax.random.PRNGKey(3), (2051, hidden_dim), jnp.float32)
    y2051 = torques_forward(x2051, w_t, b2d)
    jax.block_until_ready(y2051)
    assert y2051.shape == (2051, n_actuators)
    assert jnp.allclose(y2051, x2051 @ w_t + b2d, atol=1e-5, rtol=1e-5)

    print("KERNEL_OK")
</pallas_src>

<mosaic_0001>
module attributes {stable_mosaic.version = 11 : i64} {
  func.func @_linear_kernel(%arg0: i32, %arg1: memref<2x32xf32, #tpu.memory_space<vmem>>, %arg2: memref<32x8xf32, #tpu.memory_space<vmem>>, %arg3: memref<1x8xf32, #tpu.memory_space<vmem>>, %arg4: memref<2x8xf32, #tpu.memory_space<vmem>>) attributes {dimension_semantics = [#tpu.dimension_semantics<parallel>], iteration_bounds = array<i64: 1>, scalar_prefetch = 0 : i64, scratch_operands = 0 : i64, tpu.core_type = #tpu.core_type<tc>, window_params = [{transform_indices = @transform_0, window_bounds = array<i64: 2, 32>}, {pipeline_mode = #tpu.pipeline_mode<synchronous>, transform_indices = @transform_1, window_bounds = array<i64: 32, 8>}, {pipeline_mode = #tpu.pipeline_mode<synchronous>, transform_indices = @transform_2, window_bounds = array<i64: 1, 8>}, {transform_indices = @transform_3, window_bounds = array<i64: 2, 8>}]} {
    %c0 = arith.constant 0 : index
    %c0_0 = arith.constant 0 : index
    %0 = vector.load %arg1[%c0, %c0_0] : memref<2x32xf32, #tpu.memory_space<vmem>>, vector<2x32xf32>
    %c0_1 = arith.constant 0 : index
    %c0_2 = arith.constant 0 : index
    %1 = vector.load %arg2[%c0_1, %c0_2] : memref<32x8xf32, #tpu.memory_space<vmem>>, vector<32x8xf32>
    %cst = arith.constant dense<0.000000e+00> : vector<2x8xf32>
    %2 = tpu.matmul %0, %1, %cst {dimension_numbers = #tpu.dot_dimension_numbers<[1], [0], [0], [1], [0, 0, 1, 1], [], []>} : vector<2x32xf32>, vector<32x8xf32>, vector<2x8xf32> -> vector<2x8xf32>
    %c0_3 = arith.constant 0 : index
    %c0_4 = arith.constant 0 : index
    %3 = vector.load %arg3[%c0_3, %c0_4] : memref<1x8xf32, #tpu.memory_space<vmem>>, vector<1x8xf32>
    %4 = vector.broadcast %3 : vector<1x8xf32> to vector<2x8xf32>
    %5 = arith.addf %2, %4 : vector<2x8xf32>
    %c0_5 = arith.constant 0 : index
    %c0_6 = arith.constant 0 : index
    %6 = vector.load %arg4[%c0_5, %c0_6] : memref<2x8xf32, #tpu.memory_space<vmem>>, vector<2x8xf32>
    tpu.vector_store %arg4[%c0_5, %c0_6], %5 {strides = array<i32>} : memref<2x8xf32, #tpu.memory_space<vmem>>, vector<2x8xf32>,
    return
  }
  func.func @transform_0(%arg0: i32) -> (i32, i32) {
    %c0_i32 = arith.constant 0 : i32
    %c0_i32_0 = arith.constant 0 : i32
    return %arg0, %c0_i32 : i32, i32
  }
  func.func @transform_1(%arg0: i32) -> (i32, i32) {
    %c0_i32 = arith.constant 0 : i32
    %c0_i32_0 = arith.constant 0 : i32
    %c0_i32_1 = arith.constant 0 : i32
    return %c0_i32, %c0_i32_0 : i32, i32
  }
  func.func @transform_2(%arg0: i32) -> (i32, i32) {
    %c0_i32 = arith.constant 0 : i32
    %c0_i32_0 = arith.constant 0 : i32
    %c0_i32_1 = arith.constant 0 : i32
    return %c0_i32, %c0_i32_0 : i32, i32
  }
  func.func @transform_3(%arg0: i32) -> (i32, i32) {
    %c0_i32 = arith.constant 0 : i32
    %c0_i32_0 = arith.constant 0 : i32
    return %arg0, %c0_i32 : i32, i32
  }
}

</mosaic_0001>

<bundles_post_ra>
// kernel: tpu_custom_call.1
= control target key start
LH: loop header
LB: loop body
LE: loop exit
PB: predicated region body
PF: predicated region fallthrough
CT: control target
= control target key end

     0   :  { %v169_v3 = vmov 0.0|0.0   ;;  %vm170_vm0 = vmmov 0   ;;  %v171_v6 = vmov 0.0   ;;  %s223_s0 = inlined_call_operand.vmem [shape: f32[2,32], index: 0, kind: input, shape index: {}]   ;;  %s224_s1 = inlined_call_operand.vmem [shape: f32[32,8], index: 1, kind: input, shape index: {}]   ;;  %s225_s2 = inlined_call_operand.vmem [shape: f32[1,8], index: 2, kind: input, shape index: {}]   ;;  %s226_s3 = inlined_call_operand.hbm [shape: f32[2,8], index: 3, kind: output, shape index: {}]  }
   0x1   :  { %v16_v0 = vld [vmem:[%s224_s1] sm:$0xff]  ;;  %v17_v1 = vld [vmem:[%s224_s1 + $0x8] sm:$0xff]  ;;  %v18_v2 = vld [vmem:[%s224_s1 + $0x10] sm:$0xff]  ;;  %135 = vmatprep.subr.bf16.mxu0 %v169_v3  ;;  %132 = vmatprep.mubr.msk.f32.mxu0 %vm170_vm0, %v171_v6 }
   0x2   :  { %v136_v4 = vpack.c.bf16 %v17_v1, %v16_v0  ;;  %v19_v5 = vld [vmem:[%s224_s1 + $0x18] sm:$0xff] }
   0x3   :  { %8 = vsyncpa [#allocation3], 0  ;;  %v139_v7 = vpack.c.bf16 %v19_v5, %v18_v2  ;;  %v15_v8 = vld [vmem:[%s223_s0] sm:$0x3]  ;;  %vm27_vm1 = vcmask 261120   ;;  %s172_s24 = smov [#allocation2]  }
   0x4   :  { %137 = vmatpush3.bf16.msra.mxu0 %v136_v4  ;;  %v117_v9 = vld [vmem:[%s225_s2] ss:$0 sm:$0xff]  ;;  %s109_s1 = sshll.u32 %s172_s24, 4  ;;  %vm101_vm2 = vcmask 58368   ;;  %s110_s1 = int_to_ptr.vmem [resolvable:$true] %s109_s1 }
   0x5   :  { %138 = vmatprep.subr.bf16.mxu0 %v169_v3  ;;  %s145_s25 = scalar_lea.vmem %s110_s1, 32  ;;  %p150_p1 = scmp.lt.s32.totalorder %s110_s1, %s110_s1 }
   0x6   :  { %p146_p0 = scmp.ne.s32.totalorder %s110_s1, %s145_s25  ;;  %p151_p2 = scmp.lt.s32.totalorder %s145_s25, %s145_s25 }
   0x8   :  { %140 = vmatpush3.bf16.msra.mxu0 %v139_v7  ;;  %p152_p3 = por %p151_p2, %p150_p1 }
   0xa   :  { %p153_p4 = pnand %p152_p3, %p146_p0 }
   0xb   :  { %133 = vmatmul.mubr.msk.f32.vlgmr.msra.gmra.mrb[0].mxu0 %vm27_vm1, %v15_v8 }
  0xde   :  { %v97_v10 = vpop.f32.mrb[0].mxu0 }
  0xdf   :  { %v98_v11 = vadd.f32 %v117_v9, %v97_v10  ;;  %v134_v12 = vpop.f32.mrb[1].mxu0 }
  0xe1   :  { %102 = vst.msk [vmem:[#allocation2] sm:$0x3] %vm101_vm2, %v98_v11 }
  0xe2   :  { %156 = shalt.err (!%p153_p4)
}
  0xe3   :  { %s157_s27 = scalar_lea.hbm %s226_s3, 32 }
  0xe4   :  { %p158_p5 = scmp.ne.s32.totalorder %s226_s3, %s157_s27  ;;  %p161_p6 = scmp.lt.u32.totalorder %s157_s27, %s226_s3 }
  0xe6   :  { %p163_p7 = pnand %p161_p6, %p158_p5 }
  0xe8   :  { %166 = shalt.err (!%p163_p7)
}
  0xe9   :  { %112 = dma.vmem_to_hbm [thread:$0]  %s110_s1, 32, %s226_s3, [#allocation3]  }
  0xea   :  { %167 = dma.done.wait [#allocation3], 32  }
  0xeb   :  { %168 = vsyncadd [#allocation3], 4294967264 }
  0xec   :  { %116 = vsyncpa [#allocation3], 1 }

</bundles_post_ra>
